<compile_context>
chip_gen: v7x
topology: tpu7x:2x2x1
jax: 0.10.0
libtpu: 0.0.40
codegen_flags: <defaults>
</compile_context>

<pallas_src>
import functools

import jax
import jax.numpy as jnp
from jax import lax
from jax.experimental import pallas as pl
from jax.experimental.pallas import tpu as pltpu


def _dcd_kernel(x_ref, w_ref, b_ref, scal_ref, out_ref, *, feat_dim, max_tau, alpha):
    f32 = jnp.float32

    # --- fused projection (one MXU pass): [es | et] = x_cat @ W_blockdiag + b ---
    proj = jnp.dot(x_ref[...], w_ref[...], preferred_element_type=f32) + b_ref[...]
    es = proj[:, :feat_dim]          # lane-aligned slice (feat_dim % 128 == 0)
    et = proj[:, feat_dim:]

    # --- F.normalize(x, dim=1) with eps=1e-12:  x * rsqrt(max(||x||^2, eps^2)) ---
    eps2 = 1e-24
    es = es * lax.rsqrt(jnp.maximum(jnp.sum(es * es, axis=1, keepdims=True), eps2))
    et = et * lax.rsqrt(jnp.maximum(jnp.sum(et * et, axis=1, keepdims=True), eps2))

    # --- learnable temperature / bias (packed scalars in SMEM) ---
    tau = jnp.clip(jnp.exp(scal_ref[0, 0]), 0.0, max_tau)
    bias = scal_ref[0, 1]

    # --- both similarity orientations, issued back-to-back (independent MXU pushes
    #     overlap; L^T replaces the old serialized trace-via-matmul) ---
    logits = lax.dot_general(es, et, (((1,), (1,)), ((), ())),
                             preferred_element_type=f32) * tau + bias   # L  = es @ et.T
    logits_t = lax.dot_general(et, es, (((1,), (1,)), ((), ())),
                               preferred_element_type=f32) * tau + bias  # L^T
    n = logits.shape[0]

    # diag(L)[i] = tau * <es_i, et_i> + b, computed directly (no iota/diag mask).
    diag = tau * jnp.sum(es * et, axis=1, keepdims=True) + bias          # [n, 1]

    # --- single shared exp pass; logits bounded by +/-(max_tau + |b|) (unit-norm
    #     embeddings), so one global max shift is numerically safe ---
    gmax = jnp.max(logits)
    e = jnp.exp(logits - gmax)                                           # [n, n]
    rs = jnp.sum(e, axis=1, keepdims=True)                               # row sums [n, 1]
    cs = jnp.sum(e, axis=0, keepdims=True)                               # col sums [1, n]
    log_rs = jnp.log(rs)                                                 # only 1-D logs
    log_cs = jnp.log(cs)
    sum_log_rs = jnp.sum(log_rs)

    # cross_entropy(logits, arange(n)) = mean_i (LSE_row[i] - L[i,i])
    contrastive = (sum_log_rs + n * gmax - jnp.sum(diag)) / n

    # kl_div(log_softmax(L,1), softmax(L,0).T, 'batchmean'):
    #   n*KL = sum(sm0 * (L - L^T)) + sum(log rs) - sum(log cs)
    # (analytic log-softmax; sum_i sm0[i,j] == 1 collapses the remaining terms).
    sm0 = e * pl.reciprocal(cs, approx=True)                             # softmax(L, 0)
    invariance = (jnp.sum(sm0 * (logits - logits_t)) + sum_log_rs - jnp.sum(log_cs)) / n

    out_ref[0, 0] = contrastive + alpha * invariance


def prepare_dcd_params(w_s, b_s, w_t, b_t, tau_param, b_param):
    """One-time parameter prep, hoisted out of the per-call hot path.

    Builds the block-diagonal fused projection weight (pre-transposed to
    [in_dim, out_dim], bf16), the fused bias, and packs the two learnable
    scalars into a single (1, 2) SMEM operand.
    """
    feat_dim, s_dim = w_s.shape
    feat_dim_t, t_dim = w_t.shape
    assert feat_dim == feat_dim_t
    w_blk = jnp.zeros((s_dim + t_dim, 2 * feat_dim), jnp.float32)
    w_blk = w_blk.at[:s_dim, :feat_dim].set(jnp.transpose(w_s))
    w_blk = w_blk.at[s_dim:, feat_dim:].set(jnp.transpose(w_t))
    w_blk = w_blk.astype(jnp.bfloat16)
    b_cat = jnp.concatenate([b_s, b_t]).reshape(1, 2 * feat_dim).astype(jnp.float32)
    scalars = jnp.stack([jnp.asarray(tau_param, jnp.float32).reshape(()),
                         jnp.asarray(b_param, jnp.float32).reshape(())]).reshape(1, 2)
    return w_blk, b_cat, scalars


@functools.partial(jax.jit, static_argnames=("max_tau", "alpha"))
def dcd_loss(f_s, f_t, w_blk, b_cat, scalars, *, max_tau=10.0, alpha=0.5):
    feat_dim = b_cat.shape[1] // 2
    # The fused-projection split inside the kernel slices at lane offset feat_dim.
    assert feat_dim % 128 == 0, "fused projection requires feat_dim % 128 == 0"
    x = jnp.concatenate([f_s, f_t], axis=1).astype(jnp.bfloat16)
    kernel = functools.partial(_dcd_kernel, feat_dim=feat_dim,
                               max_tau=float(max_tau), alpha=float(alpha))
    vmem = pl.BlockSpec(memory_space=pltpu.MemorySpace.VMEM)
    smem = pl.BlockSpec(memory_space=pltpu.MemorySpace.SMEM)
    out = pl.pallas_call(
        kernel,
        out_shape=jax.ShapeDtypeStruct((1, 1), jnp.float32),
        in_specs=[vmem, vmem, vmem, smem],
        out_specs=smem,
    )(x, w_blk, b_cat, scalars)
    return out[0, 0]


def _dcd_loss_ref(f_s, f_t, w_s, b_s, w_t, b_t, tau_param, b_param,
                  *, max_tau=10.0, alpha=0.5):
    # Pure-JAX f32 reference mirroring the PyTorch forward.
    es = f_s @ w_s.T + b_s
    et = f_t @ w_t.T + b_t
    es = es / jnp.maximum(jnp.linalg.norm(es, axis=1, keepdims=True), 1e-12)
    et = et / jnp.maximum(jnp.linalg.norm(et, axis=1, keepdims=True), 1e-12)
    n = es.shape[0]
    tau = jnp.clip(jnp.exp(tau_param), 0.0, max_tau)
    logits = es @ et.T * tau + b_param
    lse = jax.scipy.special.logsumexp(logits, axis=1)
    contrastive = jnp.mean(lse - jnp.diag(logits))
    p1 = logits - lse[:, None]
    p2 = jax.nn.softmax(logits, axis=0).T
    invariance = jnp.sum(p2 * (jnp.log(p2) - p1)) / n
    return contrastive + alpha * invariance


if __name__ == "__main__":
    key = jax.random.PRNGKey(0)
    k1, k2, k3, k4, k5, k6 = jax.random.split(key, 6)

    # Small shapes consistent with the module: batch n=8, s_dim=32, t_dim=64,
    # feat_dim=128 (projection space).
    n, s_dim, t_dim, feat_dim = 8, 32, 64, 128

    f_s = jax.random.normal(k1, (n, s_dim), dtype=jnp.float32)
    f_t = jax.random.normal(k2, (n, t_dim), dtype=jnp.float32)

    # nn.Linear-style init: U(-1/sqrt(in), 1/sqrt(in)).
    ws_bound = 1.0 / (s_dim ** 0.5)
    wt_bound = 1.0 / (t_dim ** 0.5)
    w_s = jax.random.uniform(k3, (feat_dim, s_dim), minval=-ws_bound, maxval=ws_bound)
    b_s = jax.random.uniform(k4, (feat_dim,), minval=-ws_bound, maxval=ws_bound)
    w_t = jax.random.uniform(k5, (feat_dim, t_dim), minval=-wt_bound, maxval=wt_bound)
    b_t = jax.random.uniform(k6, (feat_dim,), minval=-wt_bound, maxval=wt_bound)

    # LearnableParams: init_tau=1.0, init_b=0.0
    tau_param = jnp.array(1.0, dtype=jnp.float32)
    b_param = jnp.array(0.0, dtype=jnp.float32)

    # One-time parameter prep (hoisted out of the per-step hot path).
    w_blk, b_cat, scalars = prepare_dcd_params(w_s, b_s, w_t, b_t, tau_param, b_param)

    loss = dcd_loss(f_s, f_t, w_blk, b_cat, scalars, max_tau=10.0, alpha=0.5)
    loss = jax.block_until_ready(loss)

    ref = _dcd_loss_ref(f_s, f_t, w_s, b_s, w_t, b_t, tau_param, b_param,
                        max_tau=10.0, alpha=0.5)
    assert jnp.isfinite(loss)
    # bf16 projection inputs (f32 accumulation) + approx reciprocal give ~1e-3
    # absolute deviation from the pure-f32 reference at these scales.
    assert jnp.allclose(loss, ref, rtol=2e-2, atol=2e-3), (loss, ref)

    print("KERNEL_OK")
</pallas_src>

<mosaic_0001>
module attributes {stable_mosaic.version = 11 : i64} {
  func.func @_dcd_kernel(%arg0: memref<8x96xbf16, #tpu.memory_space<vmem>>, %arg1: memref<96x256xbf16, #tpu.memory_space<vmem>>, %arg2: memref<1x256xf32, #tpu.memory_space<vmem>>, %arg3: memref<1x2xf32, #tpu.memory_space<smem>>, %arg4: memref<1x1xf32, #tpu.memory_space<smem>>) attributes {dimension_semantics = [], scalar_prefetch = 0 : i64, scratch_operands = 0 : i64, tpu.core_type = #tpu.core_type<tc>} {
    %c0 = arith.constant 0 : index
    %c0_0 = arith.constant 0 : index
    %0 = vector.load %arg0[%c0, %c0_0] : memref<8x96xbf16, #tpu.memory_space<vmem>>, vector<8x96xbf16>
    %c0_1 = arith.constant 0 : index
    %c0_2 = arith.constant 0 : index
    %1 = vector.load %arg1[%c0_1, %c0_2] : memref<96x256xbf16, #tpu.memory_space<vmem>>, vector<96x256xbf16>
    %cst = arith.constant dense<0.000000e+00> : vector<8x256xf32>
    %2 = tpu.matmul %0, %1, %cst {dimension_numbers = #tpu.dot_dimension_numbers<[1], [0], [0], [1], [0, 0, 1, 1], [], []>} : vector<8x96xbf16>, vector<96x256xbf16>, vector<8x256xf32> -> vector<8x256xf32>
    %c0_3 = arith.constant 0 : index
    %c0_4 = arith.constant 0 : index
    %3 = vector.load %arg2[%c0_3, %c0_4] : memref<1x256xf32, #tpu.memory_space<vmem>>, vector<1x256xf32>
    %4 = vector.broadcast %3 : vector<1x256xf32> to vector<8x256xf32>
    %5 = arith.addf %2, %4 : vector<8x256xf32>
    %6 = vector.extract_strided_slice %5 {offsets = [0, 0], sizes = [8, 128], strides = [1, 1]} : vector<8x256xf32> to vector<8x128xf32>
    %7 = vector.extract_strided_slice %5 {offsets = [0, 128], sizes = [8, 128], strides = [1, 1]} : vector<8x256xf32> to vector<8x128xf32>
    %8 = arith.mulf %6, %6 : vector<8x128xf32>
    %cst_5 = arith.constant dense<0.000000e+00> : vector<8xf32>
    %9 = vector.multi_reduction <add>, %8, %cst_5 [1] : vector<8x128xf32> to vector<8xf32>
    %10 = vector.shape_cast %9 : vector<8xf32> to vector<8x1xf32>
    %cst_6 = arith.constant 1.000000e-24 : f32
    %11 = vector.broadcast %cst_6 : f32 to vector<8x1xf32>
    %12 = arith.maximumf %10, %11 : vector<8x1xf32>
    %13 = math.rsqrt %12 : vector<8x1xf32>
    %14 = vector.broadcast %13 : vector<8x1xf32> to vector<8x128xf32>
    %15 = arith.mulf %6, %14 : vector<8x128xf32>
    %16 = arith.mulf %7, %7 : vector<8x128xf32>
    %cst_7 = arith.constant dense<0.000000e+00> : vector<8xf32>
    %17 = vector.multi_reduction <add>, %16, %cst_7 [1] : vector<8x128xf32> to vector<8xf32>
    %18 = vector.shape_cast %17 : vector<8xf32> to vector<8x1xf32>
    %cst_8 = arith.constant 1.000000e-24 : f32
    %19 = vector.broadcast %cst_8 : f32 to vector<8x1xf32>
    %20 = arith.maximumf %18, %19 : vector<8x1xf32>
    %21 = math.rsqrt %20 : vector<8x1xf32>
    %22 = vector.broadcast %21 : vector<8x1xf32> to vector<8x128xf32>
    %23 = arith.mulf %7, %22 : vector<8x128xf32>
    %c0_9 = arith.constant 0 : index
    %c0_10 = arith.constant 0 : index
    %24 = memref.load %arg3[%c0_9, %c0_10] : memref<1x2xf32, #tpu.memory_space<smem>>
    %25 = math.exp %24 : f32
    %cst_11 = arith.constant 0.000000e+00 : f32
    %cst_12 = arith.constant 1.000000e+01 : f32
    %26 = arith.maximumf %cst_11, %25 : f32
    %27 = arith.minimumf %cst_12, %26 : f32
    %c0_13 = arith.constant 0 : index
    %c1 = arith.constant 1 : index
    %28 = memref.load %arg3[%c0_13, %c1] : memref<1x2xf32, #tpu.memory_space<smem>>
    %cst_14 = arith.constant dense<0.000000e+00> : vector<8x8xf32>
    %29 = tpu.matmul %15, %23, %cst_14 {dimension_numbers = #tpu.dot_dimension_numbers<[1], [1], [0], [0], [0, 0, 1, 0], [], []>} : vector<8x128xf32>, vector<8x128xf32>, vector<8x8xf32> -> vector<8x8xf32>
    %30 = vector.broadcast %27 : f32 to vector<8x8xf32>
    %31 = arith.mulf %29, %30 : vector<8x8xf32>
    %32 = vector.broadcast %28 : f32 to vector<8x8xf32>
    %33 = arith.addf %31, %32 : vector<8x8xf32>
    %cst_15 = arith.constant dense<0.000000e+00> : vector<8x8xf32>
    %34 = tpu.matmul %23, %15, %cst_15 {dimension_numbers = #tpu.dot_dimension_numbers<[1], [1], [0], [0], [0, 0, 1, 0], [], []>} : vector<8x128xf32>, vector<8x128xf32>, vector<8x8xf32> -> vector<8x8xf32>
    %35 = vector.broadcast %27 : f32 to vector<8x8xf32>
    %36 = arith.mulf %34, %35 : vector<8x8xf32>
    %37 = vector.broadcast %28 : f32 to vector<8x8xf32>
    %38 = arith.addf %36, %37 : vector<8x8xf32>
    %39 = arith.mulf %15, %23 : vector<8x128xf32>
    %cst_16 = arith.constant dense<0.000000e+00> : vector<8xf32>
    %40 = vector.multi_reduction <add>, %39, %cst_16 [1] : vector<8x128xf32> to vector<8xf32>
    %41 = vector.shape_cast %40 : vector<8xf32> to vector<8x1xf32>
    %42 = vector.broadcast %27 : f32 to vector<8x1xf32>
    %43 = arith.mulf %42, %41 : vector<8x1xf32>
    %44 = vector.broadcast %28 : f32 to vector<8x1xf32>
    %45 = arith.addf %43, %44 : vector<8x1xf32>
    %46 = vector.shape_cast %33 : vector<8x8xf32> to vector<1x8x8xf32>
    %cst_17 = arith.constant dense<0xFF800000> : vector<1xf32>
    %47 = vector.multi_reduction <maximumf>, %46, %cst_17 [1, 2] : vector<1x8x8xf32> to vector<1xf32>
    %48 = vector.shape_cast %47 : vector<1xf32> to vector<1x1x1xf32>
    %49 = vector.extract %48[0, 0, 0] : f32 from vector<1x1x1xf32>
    %50 = vector.broadcast %49 : f32 to vector<8x8xf32>
    %51 = arith.subf %33, %50 : vector<8x8xf32>
    %52 = math.exp %51 : vector<8x8xf32>
    %cst_18 = arith.constant dense<0.000000e+00> : vector<8xf32>
    %53 = vector.multi_reduction <add>, %52, %cst_18 [1] : vector<8x8xf32> to vector<8xf32>
    %54 = vector.shape_cast %53 : vector<8xf32> to vector<8x1xf32>
    %cst_19 = arith.constant dense<0.000000e+00> : vector<8xf32>
    %55 = vector.multi_reduction <add>, %52, %cst_19 [0] : vector<8x8xf32> to vector<8xf32>
    %56 = vector.shape_cast %55 : vector<8xf32> to vector<1x8xf32>
    %57 = math.log %54 : vector<8x1xf32>
    %58 = math.log %56 : vector<1x8xf32>
    %59 = vector.shape_cast %57 : vector<8x1xf32> to vector<1x8x1xf32>
    %cst_20 = arith.constant dense<0.000000e+00> : vector<1xf32>
    %60 = vector.multi_reduction <add>, %59, %cst_20 [1, 2] : vector<1x8x1xf32> to vector<1xf32>
    %61 = vector.shape_cast %60 : vector<1xf32> to vector<1x1x1xf32>
    %62 = vector.extract %61[0, 0, 0] : f32 from vector<1x1x1xf32>
    %cst_21 = arith.constant 8.000000e+00 : f32
    %63 = arith.mulf %cst_21, %49 : f32
    %64 = arith.addf %62, %63 : f32
    %65 = vector.shape_cast %45 : vector<8x1xf32> to vector<1x8x1xf32>
    %cst_22 = arith.constant dense<0.000000e+00> : vector<1xf32>
    %66 = vector.multi_reduction <add>, %65, %cst_22 [1, 2] : vector<1x8x1xf32> to vector<1xf32>
    %67 = vector.shape_cast %66 : vector<1xf32> to vector<1x1x1xf32>
    %68 = vector.extract %67[0, 0, 0] : f32 from vector<1x1x1xf32>
    %69 = arith.subf %64, %68 : f32
    %cst_23 = arith.constant 8.000000e+00 : f32
    %70 = arith.divf %69, %cst_23 : f32
    %71 = tpu.reciprocal %56 {approx = true} : vector<1x8xf32> -> vector<1x8xf32>
    %72 = vector.broadcast %71 : vector<1x8xf32> to vector<8x8xf32>
    %73 = arith.mulf %52, %72 : vector<8x8xf32>
    %74 = arith.subf %33, %38 : vector<8x8xf32>
    %75 = arith.mulf %73, %74 : vector<8x8xf32>
    %76 = vector.shape_cast %75 : vector<8x8xf32> to vector<1x8x8xf32>
    %cst_24 = arith.constant dense<0.000000e+00> : vector<1xf32>
    %77 = vector.multi_reduction <add>, %76, %cst_24 [1, 2] : vector<1x8x8xf32> to vector<1xf32>
    %78 = vector.shape_cast %77 : vector<1xf32> to vector<1x1x1xf32>
    %79 = vector.extract %78[0, 0, 0] : f32 from vector<1x1x1xf32>
    %80 = arith.addf %79, %62 : f32
    %81 = vector.shape_cast %58 : vector<1x8xf32> to vector<1x1x8xf32>
    %cst_25 = arith.constant dense<0.000000e+00> : vector<1xf32>
    %82 = vector.multi_reduction <add>, %81, %cst_25 [1, 2] : vector<1x1x8xf32> to vector<1xf32>
    %83 = vector.shape_cast %82 : vector<1xf32> to vector<1x1x1xf32>
    %84 = vector.extract %83[0, 0, 0] : f32 from vector<1x1x1xf32>
    %85 = arith.subf %80, %84 : f32
    %cst_26 = arith.constant 8.000000e+00 : f32
    %86 = arith.divf %85, %cst_26 : f32
    %cst_27 = arith.constant 5.000000e-01 : f32
    %87 = arith.mulf %cst_27, %86 : f32
    %88 = arith.addf %70, %87 : f32
    %c0_28 = arith.constant 0 : index
    %c0_29 = arith.constant 0 : index
    %89 = memref.load %arg4[%c0_28, %c0_29] : memref<1x1xf32, #tpu.memory_space<smem>>
    memref.store %88, %arg4[%c0_28, %c0_29] : memref<1x1xf32, #tpu.memory_space<smem>>
    return
  }
}

</mosaic_0001>

<bundles_post_ra>
// kernel: dcd_loss.1
= control target key start
LH: loop header
LB: loop body
LE: loop exit
PB: predicated region body
PF: predicated region fallthrough
CT: control target
= control target key end

     0   :  { %9 = vsyncpa [#allocation3], 0  ;;  %s662_s0 = inlined_call_operand.vmem [shape: bf16[8,96], index: 0, kind: input, shape index: {}]   ;;  %s663_s1 = inlined_call_operand.hbm [shape: bf16[96,256], index: 1, kind: input, shape index: {}]   ;;  %s664_s2 = inlined_call_operand.vmem [shape: f32[1,256], index: 2, kind: input, shape index: {}]   ;;  %s665_s3 = inlined_call_operand.vmem [shape: f32[1,2], index: 3, kind: input, shape index: {}]   ;;  %s666_s4 = inlined_call_operand.hbm [shape: f32[1,1], index: 4, kind: output, shape index: {}]  }
   0x1   :  { %10 = vsyncpa [#allocation5], 0 }
   0x2   :  { %11 = vsyncpa [#allocation4], 0  ;;  %s583_s15 = smov [#allocation2]   ;;  %s34_s19 = sshll.u32 %s665_s3, 4  ;;  %s35_s19 = int_to_ptr.vmem [resolvable:$true] %s34_s19 }
   0x3   :  { %s19_s16 = sshll.u32 %s583_s15, 4  ;;  %s533_s22 = scalar_lea.hbm %s663_s1, 1536  ;;  %s20_s16 = int_to_ptr.vmem [resolvable:$true] %s19_s16 }
   0x4   :  { %p534_p0 = scmp.ne.s32.totalorder %s663_s1, %s533_s22  ;;  %p537_p1 = scmp.lt.u32.totalorder %s533_s22, %s663_s1 }
   0x6   :  { %p539_p2 = pnand %p537_p1, %p534_p0 }
   0x8   :  { %542 = shalt.err (!%p539_p2)
}
   0x9   :  { %s543_s27 = scalar_lea.vmem %s20_s16, 1536  ;;  %p548_p4 = scmp.lt.s32.totalorder %s20_s16, %s20_s16 }
   0xa   :  { %p544_p3 = scmp.ne.s32.totalorder %s20_s16, %s543_s27  ;;  %p549_p5 = scmp.lt.s32.totalorder %s543_s27, %s543_s27 }
   0xc   :  { %p550_p6 = por %p549_p5, %p548_p4 }
   0xe   :  { %p551_p7 = pnand %p550_p6, %p544_p3 }
  0x10   :  { %554 = shalt.err (!%p551_p7)
}
  0x11   :  { %s584_s3 = smov 128   ;;  %s585_s28 = smov 8  }
  0x12   :  { %25 = dma.hbm_to_vmem [thread:$0]  %s663_s1, 1536, %s20_s16, [#allocation3], %s584_s3, %s584_s3, %s585_s28  }
  0x13   :  { %s555_s5 = scalar_lea.vmem %s35_s19, 16  ;;  %p560_p9 = scmp.lt.s32.totalorder %s35_s19, %s35_s19 }
  0x14   :  { %p556_p8 = scmp.ne.s32.totalorder %s35_s19, %s555_s5  ;;  %p561_p10 = scmp.lt.s32.totalorder %s555_s5, %s555_s5 }
  0x16   :  { %p562_p11 = por %p561_p10, %p560_p9 }
  0x18   :  { %p563_p12 = pnand %p562_p11, %p556_p8 }
  0x1a   :  { %566 = shalt.err (!%p563_p12)
}
  0x1b   :  { %s586_s6 = smov [#allocation6]  }
  0x1c   :  { %37 = dma.vmem_to_smem %s35_s19, 16, %s586_s6, [#allocation5]  }
  0x1d   :  { %577 = dma.done.wait [#allocation3], 1536  }
  0x1e   :  { %578 = vsyncadd [#allocation3], 4294965760 }
  0x1f   :  { %579 = dma.done.wait [#allocation5], 16  }
  0x20   :  { %580 = vsyncadd [#allocation5], 4294967280 }
  0x21   :  { %44 = sfence }
  0x22   :  { %v501_v0 = vld [vmem:[#allocation2 + $0x4] ss:$8 sps:$4 sm:$0xff]   ;;  %v503_v1 = vld [vmem:[#allocation2] ss:$8 sps:$4 sm:$0xff]   ;;  %v587_v2 = vmov 0   ;;  %vm131_vm0 = vcmask 785408   ;;  %v61_v14 = vlaneseq }
  0x23   :  { %167 = vmatprep.mubr.bf16.mxu0 %v587_v2  ;;  %135 = vmatprep.subr.bf16.mxu0 %v501_v0  ;;  %v504_v3 = vld [vmem:[#allocation2 + $0x14] ss:$8 sps:$4 sm:$0xff]   ;;  %v506_v4 = vld [vmem:[#allocation2 + $0x10] ss:$8 sps:$4 sm:$0xff]   ;;  %v507_v5 = vld [vmem:[#allocation2 + $0x24] ss:$8 sps:$4 sm:$0xff]  }
  0x24   :  { %136 = vmatpush1.bf16.msra.mxu0 %v503_v1  ;;  %v509_v6 = vld [vmem:[#allocation2 + $0x20] ss:$8 sps:$4 sm:$0xff]   ;;  %v510_v7 = vld [vmem:[#allocation2 + $0x34] ss:$8 sps:$4 sm:$0xff]   ;;  %v512_v8 = vld [vmem:[#allocation2 + $0x30] ss:$8 sps:$4 sm:$0xff]  }
  0x25   :  { %137 = vmatprep.subr.bf16.mxu0 %v504_v3  ;;  %v513_v9 = vld [vmem:[#allocation2 + $0x44] ss:$8 sps:$4 sm:$0xff]   ;;  %v515_v10 = vld [vmem:[#allocation2 + $0x40] ss:$8 sps:$4 sm:$0xff]   ;;  %v516_v11 = vld [vmem:[#allocation2 + $0x54] ss:$8 sps:$4 sm:$0xff]  }
  0x26   :  { %v518_v12 = vld [vmem:[#allocation2 + $0x50] ss:$8 sps:$4 sm:$0xff]   ;;  %v46_v13 = vld [vmem:[%s662_s0] sm:$0xf]  ;;  %v62_v15 = vshrl.u32 %v61_v14, 7  ;;  %v588_v29 = vmov 0.0  }
  0x27   :  { %v59_v17 = vld [vmem:[%s664_s2] sm:$0x3]  ;;  %469 = vmatprep.subr.mxu1 %v588_v29  ;;  %vm589_vm1 = vmmov 0   ;;  %s188_s0 = sld [smem:[#allocation6]]  ;;  %s590_s10 = smov 0.0   ;;  %vm375_vm2 = vcmask 7168  }
  0x28   :  { %138 = vmatpush1.bf16.msra.mxu0 %v506_v4  ;;  %v67_v16 = vsub.s32 1, %v62_v15  ;;  %v63_v18 = vsub.s32 0, %v62_v15  ;;  %471 = vmatprep.mubr.msk.f32.mxu1 %vm589_vm1, %v588_v29  ;;  %s464_s12 = sld [smem:[#allocation6 + $0x1]]  ;;  %s591_s13 = smov 10.0   ;;  %vm347_vm3 = vcmask 64512   ;;  %vm417_vm4 = vcmask 57344  }
  0x29   :  { %139 = vmatprep.subr.bf16.mxu0 %v507_v5  ;;  %s567_s30 = scalar_lea.hbm %s666_s4, 16 }
  0x2a   :  { %v68_v19 = vrot.slane %v59_v17, %v67_v16  ;;  %v64_v20 = vrot.slane %v59_v17, %v63_v18  ;;  %p568_p13 = scmp.ne.s32.totalorder %s666_s4, %s567_s30  ;;  %p571_p0 = scmp.lt.u32.totalorder %s567_s30, %s666_s4 }
  0x2c   :  { %140 = vmatpush1.bf16.msra.mxu0 %v509_v6  ;;  %p573_p1 = pnand %p571_p0, %p568_p13 }
  0x2d   :  { %141 = vmatprep.subr.bf16.mxu0 %v510_v7  ;;  %v189_v30 = vstv %s188_s0 }
  0x2e   :  { %v190_v31 = vmul.f32 1.442695, %v189_v30  ;;  %v268_v44 = vstv %s464_s12 }
  0x30   :  { %142 = vmatpush1.bf16.msra.mxu0 %v512_v8  ;;  %519 = vpow2.f32 %v190_v31 }
  0x31   :  { %143 = vmatprep.subr.bf16.mxu0 %v513_v9 }
  0x34   :  { %144 = vmatpush1.bf16.msra.mxu0 %v515_v10 }
  0x35   :  { %145 = vmatprep.subr.bf16.mxu0 %v516_v11 }
  0x38   :  { %146 = vmatpush1.bf16.msra.mxu0 %v518_v12 }
  0x3a   :  { %v520_v32 = vpop.eup %519 }
  0x3b   :  { %463 = vmatmul.mubr.msk.bf16.vlgmr.msra.gmra.mrb[0].mxu0 %vm131_vm0, %v46_v13  ;;  %479 = vpush %v520_v32 }
  0x6c   :  { %s480_s2 = spop %479 }
  0x6d   :  { %s193_s11 = smax.f32 %s590_s10, %s480_s2 }
  0x6e   :  { %s194_s14 = smin.f32 %s591_s13, %s193_s11 }
  0x6f   :  { %v266_v42 = vstv %s194_s14 }
 0x10e   :  { %v169_v21 = vpop.f32.mrb[0].mxu0 }
 0x10f   :  { %v171_v22 = vpop.f32.mrb[1].mxu0  ;;  %v170_v26 = vadd.f32 %v169_v21, %v64_v20 }
 0x110   :  { %v172_v23 = vadd.f32 %v171_v22, %v68_v19  ;;  %v173_v24 = vpop.f32.mrb[2].mxu0 }
 0x111   :  { %v174_v25 = vpop.f32.mrb[3].mxu0  ;;  %v176_v28 = vmul.f32 %v170_v26, %v170_v26 }
 0x112   :  { %v182_v27 = vmul.f32 %v172_v23, %v172_v23 }
 0x114   :  { %183 = vadd.xlane.f32.xlu0 %v182_v27 }
 0x118   :  { %177 = vadd.xlane.f32.xlu0 %v176_v28 }
 0x1a1   :  { %v184_v33 = vpop.xlane.xlu0 %183 }
 0x1a2   :  { %v185_v34 = vmax.f32 %v184_v33, 1e-24 }
 0x1a4   :  { %521 = vrsqrt.f32 %v185_v34 }
 0x1a5   :  { %v178_v35 = vpop.xlane.xlu0 %177 }
 0x1a6   :  { %v179_v36 = vmax.f32 %v178_v35, 1e-24 }
 0x1a8   :  { %523 = vrsqrt.f32 %v179_v36 }
 0x1ae   :  { %v522_v37 = vpop.eup %521 }
 0x1af   :  { %v187_v38 = vmul.f32 %v522_v37, %v172_v23 }
 0x1b1   :  { %470 = vmatpush3.xpose.msra.mxu1 %v187_v38 }
 0x1b2   :  { %v524_v39 = vpop.eup %523  ;;  %474 = vmatprep.subr.mxu1 %v588_v29 }
 0x1b3   :  { %v181_v40 = vmul.f32 %v524_v39, %v170_v26 }
 0x1b5   :  { %472 = vmatmul.mubr.f32.vlgmr.msra.gmra.mrb[0].mxu1 %v181_v40  ;;  %v342_v41 = vmul.f32 %v187_v38, %v181_v40 }
 0x1b6   :  { %475 = vmatpush3.xpose.msra.mxu1 %v181_v40  ;;  %476 = vmatprep.mubr.msk.f32.mxu1 %vm589_vm1, %v588_v29 }
 0x1b7   :  { %343 = vadd.xlane.f32.xlu0 %v342_v41 }
 0x1b9   :  { %477 = vmatmul.mubr.f32.vlgmr.msra.gmra.mrb[2].mxu1 %v187_v38 }
 0x244   :  { %v344_v43 = vpop.xlane.xlu0 %343 }
 0x245   :  { %v345_v45 = vmul.f32 %v344_v43, %v266_v42 }
 0x247   :  { %v346_v46 = vadd.f32 %v345_v45, %v268_v44 }
 0x249   :  { %v388_v47 = vsel %vm375_vm2, %v346_v46, 0.0 }
 0x24a   :  { %389 = vadd.xlane.f32.xlu0 %v388_v47 }
 0x288   :  { %v262_v48 = vpop.f32.mrb[0].mxu1 }
 0x289   :  { %v267_v49 = vmul.f32 %v266_v42, %v262_v48  ;;  %v473_v50 = vpop.f32.mrb[1].mxu1 }
 0x28b   :  { %v269_v51 = vadd.f32 %v268_v44, %v267_v49 }
 0x28c   :  { %v336_v52 = vpop.f32.mrb[2].mxu1 }
 0x28d   :  { %v478_v53 = vpop.f32.mrb[3].mxu1  ;;  %v348_v54 = vsel %vm347_vm3, %v269_v51, -inf  ;;  %v340_v9 = vmul.f32 %v336_v52, %v266_v42 }
 0x28e   :  { %349 = vmax.xlane.f32.xlu1 %v348_v54 }
 0x28f   :  { %v341_v10 = vadd.f32 %v340_v9, %v268_v44 }
 0x291   :  { %v404_v15 = vsub.f32 %v269_v51, %v341_v10 }
 0x2d7   :  { %v390_v23 = vpop.xlane.xlu0 %389 }
 0x2d8   :  { %v391_v24 = vrot.slane %v390_v23, 4 }
 0x2da   :  { %v392_v26 = vadd.f32 %v391_v24, %v390_v23 }
 0x2dc   :  { %v393_v28 = vrot.slane %v392_v26, 2 }
 0x2de   :  { %v394_v35 = vadd.f32 %v393_v28, %v392_v26 }
 0x2e0   :  { %v395_v41 = vrot.slane %v394_v35, 1 }
 0x2e2   :  { %v396_v46 = vadd.f32 %v395_v41, %v394_v35 }
 0x31b   :  { %v350_v55 = vpop.xlane.xlu1 %349 }
 0x31c   :  { %v351_v56 = vrot.slane %v350_v55, 4 }
 0x31e   :  { %v352_v57 = vmax.f32 %v350_v55, %v351_v56 }
 0x320   :  { %v353_v58 = vrot.slane %v352_v57, 2 }
 0x322   :  { %v354_v59 = vmax.f32 %v352_v57, %v353_v58 }
 0x324   :  { %v355_v60 = vrot.slane %v354_v59, 1 }
 0x326   :  { %v356_v61 = vmax.f32 %v354_v59, %v355_v60 }
 0x328   :  { %481 = vpush %v356_v61 }
 0x359   :  { %s643_s15 = spop %481 }
 0x35a   :  { %v358_v62 = vstv %s643_s15  ;;  %s386_s16 = smul.f32 8.0, %s643_s15 }
 0x35b   :  { %v359_v63 = vsub.f32 %v269_v51, %v358_v62 }
 0x35d   :  { %v360_v0 = vmul.f32 1.442695, %v359_v63 }
 0x35f   :  { %525 = vpow2.f32 %v360_v0 }
 0x369   :  { %v526_v1 = vpop.eup %525 }
 0x36a   :  { %v362_v2 = vsel %vm347_vm3, %v526_v1, 0.0 }
 0x36b   :  { %363 = vadd.xlane.f32.xlu1 %v362_v2  ;;  %v365_v3 = vrot.slane %v362_v2, 4 }
 0x36d   :  { %v366_v4 = vadd.f32 %v365_v3, %v362_v2 }
 0x36f   :  { %v367_v5 = vrot.slane %v366_v4, 2 }
 0x371   :  { %v368_v6 = vadd.f32 %v367_v5, %v366_v4 }
 0x373   :  { %v369_v7 = vrot.slane %v368_v6, 1 }
 0x375   :  { %v370_v8 = vadd.f32 %v369_v7, %v368_v6 }
 0x377   :  { %527 = vlog2.f32 %v370_v8 }
 0x378   :  { %529 = vrcp.f32 %v370_v8 }
 0x381   :  { %v528_v11 = vpop.eup %527 }
 0x382   :  { %v530_v12 = vpop.eup %529  ;;  %v374_v13 = vmul.f32 0.6931472, %v528_v11 }
 0x383   :  { %v403_v14 = vmul.f32 %v530_v12, %v526_v1 }
 0x384   :  { %v418_v16 = vsel %vm417_vm4, %v374_v13, 0.0 }
 0x385   :  { %419 = vadd.xlane.f32.xlu0 %v418_v16  ;;  %v405_v17 = vmul.f32 %v404_v15, %v403_v14 }
 0x387   :  { %v406_v22 = vsel %vm347_vm3, %v405_v17, 0.0 }
 0x3f8   :  { %v364_v18 = vpop.xlane.xlu1 %363 }
 0x3f9   :  { %531 = vlog2.f32 %v364_v18 }
 0x403   :  { %v532_v19 = vpop.eup %531 }
 0x404   :  { %v372_v20 = vmul.f32 0.6931472, %v532_v19 }
 0x406   :  { %v376_v21 = vsel %vm375_vm2, %v372_v20, 0.0 }
 0x407   :  { %377 = vadd.xlane.f32.xlu1 %v376_v21 }
 0x40b   :  { %407 = vadd.xlane.f32.xlu1 %v406_v22 }
 0x412   :  { %v420_v25 = vpop.xlane.xlu0 %419 }
 0x413   :  { %v421_v27 = vrot.slane %v420_v25, 4 }
 0x415   :  { %v422_v29 = vadd.f32 %v421_v27, %v420_v25 }
 0x417   :  { %v423_v33 = vrot.slane %v422_v29, 2 }
 0x419   :  { %v424_v40 = vadd.f32 %v423_v33, %v422_v29 }
 0x41b   :  { %v425_v47 = vrot.slane %v424_v40, 1 }
 0x41d   :  { %v426_v50 = vadd.f32 %v425_v47, %v424_v40 }
 0x494   :  { %v378_v30 = vpop.xlane.xlu1 %377 }
 0x495   :  { %v379_v31 = vrot.slane %v378_v30, 4 }
 0x497   :  { %v380_v32 = vadd.f32 %v379_v31, %v378_v30 }
 0x498   :  { %v408_v34 = vpop.xlane.xlu1 %407 }
 0x499   :  { %v381_v36 = vrot.slane %v380_v32, 2  ;;  %v409_v37 = vrot.slane %v408_v34, 4 }
 0x49b   :  { %v410_v38 = vadd.f32 %v409_v37, %v408_v34  ;;  %v382_v39 = vadd.f32 %v381_v36, %v380_v32 }
 0x49d   :  { %v411_v42 = vrot.slane %v410_v38, 2  ;;  %v383_v43 = vrot.slane %v382_v39, 1 }
 0x49f   :  { %v412_v44 = vadd.f32 %v411_v42, %v410_v38  ;;  %v384_v45 = vadd.f32 %v383_v43, %v382_v39 }
 0x4a1   :  { %483 = vpush %v384_v45  ;;  %v413_v48 = vrot.slane %v412_v44, 1 }
 0x4a2   :  { %485 = vpush %v396_v46 }
 0x4a3   :  { %v414_v49 = vadd.f32 %v413_v48, %v412_v44 }
 0x4a5   :  { %487 = vpush %v414_v49 }
 0x4a6   :  { %489 = vpush %v426_v50 }
 0x4d2   :  { %s484_s17 = spop %483 }
 0x4d3   :  { %s387_s18 = sadd.f32 %s484_s17, %s386_s16  ;;  %s486_s19 = spop %485 }
 0x4d5   :  { %s398_s22 = ssub.f32 %s387_s18, %s486_s19 }
 0x4d6   :  { %s488_s20 = spop %487 }
 0x4d7   :  { %s416_s21 = sadd.f32 %s488_s20, %s484_s17  ;;  %s490_s23 = spop %489 }
 0x4d8   :  { %s401_s26 = smul.f32 0.125, %s398_s22 }
 0x4d9   :  { %s428_s24 = ssub.f32 %s416_s21, %s490_s23 }
 0x4db   :  { %s431_s25 = smul.f32 0.125, %s428_s24 }
 0x4dd   :  { %s432_s27 = smul.f32 0.5, %s431_s25 }
 0x4df   :  { %s433_s3 = sadd.f32 %s432_s27, %s401_s26 }
 0x4e1   :  { %435 = sst [smem:[#allocation7]] %s433_s3 }
 0x4e2   :  { %576 = shalt.err (!%p573_p1)
}
 0x4e3   :  { %s592_s8 = smov [#allocation7]  }
 0x4e4   :  { %443 = dma.smem_to_hbm %s592_s8, 16, %s666_s4, [#allocation4]  }
 0x4e5   :  { %581 = dma.done.wait [#allocation4], 16  }
 0x4e6   :  { %582 = vsyncadd [#allocation4], 4294967280 }
 0x4e7   :  { %447 = sfence }
 0x4e8   :  { %448 = vsyncpa [#allocation3], 1 }
 0x4e9   :  { %449 = vsyncpa [#allocation4], 1 }
 0x4ea   :  { %450 = vsyncpa [#allocation5], 1 }

</bundles_post_ra>
